<compile_context>
chip_gen: v7x
topology: tpu7x:2x2x1
jax: 0.10.0
libtpu: 0.0.40
codegen_flags: <defaults>
</compile_context>

<pallas_src>
import numpy as np
import jax
import jax.numpy as jnp
from jax.experimental import pallas as pl
from jax.experimental.pallas import tpu as pltpu


def ordistic_kernel(xT_ref, w_ref, mus_ref, o_ref):
    # xT_ref:  (D, tN)  transposed input tile (features on sublanes, batch on lanes)
    # w_ref:   (D, 1)   linear weight column, broadcast along lanes
    # mus_ref: (K, 1)   ordered thresholds with the bias pre-folded (mus - b)
    # o_ref:   (K, tN)  log-probabilities (transposed; wrapper transposes back)
    xw = xT_ref[...] * w_ref[...]                         # (D, tN)  VPU mul
    z = jnp.sum(xw, axis=0, keepdims=True)                # (1, tN)  sublane reduce
    s = -jnp.abs(mus_ref[...] - z)                        # (K, tN)  broadcast
    # log_softmax over the K (sublane) axis, max-subtracted for stability
    m = jnp.max(s, axis=0, keepdims=True)                 # (1, tN)
    e = jnp.exp(s - m)                                    # (K, tN)  EUP
    lse = jnp.log(jnp.sum(e, axis=0, keepdims=True)) + m  # (1, tN)
    o_ref[...] = (s - lse).astype(o_ref.dtype)


def get_mus(itanh_mu2, log_diff_itanh_mus, K):
    """Plain-JAX glue replicating OrdisticRegression.get_mus (dtype='torch')."""
    parts = [jnp.full((1,), -1.0, jnp.float32), jnp.tanh(itanh_mu2)]
    if K >= 4:
        parts.append(jnp.tanh(itanh_mu2 + jnp.cumsum(jnp.exp(log_diff_itanh_mus))))
    parts.append(jnp.full((1,), 1.0, jnp.float32))
    return jnp.concatenate(parts)                         # (K,)


def _pick_tile_n(N, D, budget_bytes=24 << 20):
    """Largest 128-multiple tile of N whose double-buffered x block fits the budget."""
    if N < 128 or N % 128 != 0:
        # Full extent satisfies the (8,128) BlockSpec rule; fine for small/ragged N.
        return N
    per_col = 2 * D * 4                                   # double-buffered f32 column
    cap = max(128, (budget_bytes // per_col) // 128 * 128)
    cap = min(cap, 2048)
    tile = 128
    while tile * 2 <= cap and N % (tile * 2) == 0:
        tile *= 2
    return tile


def ordistic_regression_forward(x, weight, bias, itanh_mu2, log_diff_itanh_mus,
                                K, *, tile_n=None):
    N, D = x.shape
    mus = get_mus(itanh_mu2, log_diff_itanh_mus, K)                    # (K,)
    mus_b = (mus - bias.reshape(())).reshape(K, 1).astype(jnp.float32)  # bias folded
    w_col = weight.reshape(D, 1).astype(jnp.float32)                   # (D, 1)
    xT = x.T.astype(jnp.float32)                                       # (D, N) lane-dense

    if tile_n is None:
        tile_n = _pick_tile_n(N, D)
    assert N % tile_n == 0, "N must be divisible by tile_n"
    grid = (N // tile_n,)

    out_t = pl.pallas_call(
        ordistic_kernel,
        out_shape=jax.ShapeDtypeStruct((K, N), jnp.float32),
        grid_spec=pltpu.PrefetchScalarGridSpec(
            num_scalar_prefetch=0,
            grid=grid,
            in_specs=[
                pl.BlockSpec((D, tile_n), lambda i: (0, i)),   # x^T tile (streamed)
                pl.BlockSpec((D, 1), lambda i: (0, 0)),        # weight (resident)
                pl.BlockSpec((K, 1), lambda i: (0, 0)),        # mus - b (resident)
            ],
            out_specs=pl.BlockSpec((K, tile_n), lambda i: (0, i)),
        ),
        compiler_params=pltpu.CompilerParams(
            dimension_semantics=("parallel",),       # shards grid across TCs on v7x
            vmem_limit_bytes=32 * 1024 * 1024),      # safe across v5e/v6e/v7x
        cost_estimate=pl.CostEstimate(
            flops=2 * N * D + 6 * N * K,
            transcendentals=N * K + N,
            bytes_accessed=4 * (N * D + N * K + D + K)),
    )(xT, w_col, mus_b)

    # Layout plumbing back to the module's (N, K) convention.
    return out_t.T


def reference_forward(x, weight, bias, itanh_mu2, log_diff_itanh_mus, K):
    mus = get_mus(itanh_mu2, log_diff_itanh_mus, K).reshape(1, K)
    z = x @ weight.reshape(-1, 1) + bias.reshape(1, 1)
    s = -jnp.abs(mus - z)
    return jax.nn.log_softmax(s, axis=1)


if __name__ == "__main__":
    # Small shapes consistent with the module: N samples, D features, K ordered levels.
    N, D, K = 16, 32, 5

    key = jax.random.PRNGKey(0)
    kx, kw, kb = jax.random.split(key, 3)

    x = jax.random.normal(kx, (N, D), dtype=jnp.float32)

    # Deterministic parameter init (mirrors nn.Linear(D, 1) shapes).
    bound = 1.0 / np.sqrt(D)
    weight = jax.random.uniform(kw, (1, D), jnp.float32, -bound, bound)
    bias = jax.random.uniform(kb, (1,), jnp.float32, -bound, bound)

    # itanh_mu2 / log_diff_itanh_mus exactly as in __init__.
    init_mus = np.linspace(-1.0, 1.0, K)
    itanh_mu2 = jnp.asarray([np.arctanh(init_mus[1])], dtype=jnp.float32)
    log_diff_itanh_mus = jnp.asarray(
        np.log(np.diff(np.arctanh(init_mus[1:-1]))), dtype=jnp.float32)

    out = ordistic_regression_forward(
        x, weight, bias, itanh_mu2, log_diff_itanh_mus, K)
    out = jax.block_until_ready(out)

    ref = reference_forward(x, weight, bias, itanh_mu2, log_diff_itanh_mus, K)
    np.testing.assert_allclose(np.asarray(out), np.asarray(ref),
                               rtol=1e-5, atol=1e-5)

    print("KERNEL_OK")
</pallas_src>

<mosaic_0001>
module attributes {stable_mosaic.version = 11 : i64} {
  func.func @ordistic_kernel(%arg0: i32, %arg1: memref<32x16xf32, #tpu.memory_space<vmem>>, %arg2: memref<32x1xf32, #tpu.memory_space<vmem>>, %arg3: memref<5x1xf32, #tpu.memory_space<vmem>>, %arg4: memref<5x16xf32, #tpu.memory_space<vmem>>) attributes {dimension_semantics = [#tpu.dimension_semantics<parallel>], iteration_bounds = array<i64: 1>, scalar_prefetch = 0 : i64, scratch_operands = 0 : i64, tpu.core_type = #tpu.core_type<tc>, window_params = [{transform_indices = @transform_0, window_bounds = array<i64: 32, 16>}, {pipeline_mode = #tpu.pipeline_mode<synchronous>, transform_indices = @transform_1, window_bounds = array<i64: 32, 1>}, {pipeline_mode = #tpu.pipeline_mode<synchronous>, transform_indices = @transform_2, window_bounds = array<i64: 5, 1>}, {transform_indices = @transform_3, window_bounds = array<i64: 5, 16>}]} {
    %c0 = arith.constant 0 : index
    %c0_0 = arith.constant 0 : index
    %0 = vector.load %arg1[%c0, %c0_0] : memref<32x16xf32, #tpu.memory_space<vmem>>, vector<32x16xf32>
    %c0_1 = arith.constant 0 : index
    %c0_2 = arith.constant 0 : index
    %1 = vector.load %arg2[%c0_1, %c0_2] : memref<32x1xf32, #tpu.memory_space<vmem>>, vector<32x1xf32>
    %2 = vector.broadcast %1 : vector<32x1xf32> to vector<32x16xf32>
    %3 = arith.mulf %0, %2 : vector<32x16xf32>
    %cst = arith.constant dense<0.000000e+00> : vector<16xf32>
    %4 = vector.multi_reduction <add>, %3, %cst [0] : vector<32x16xf32> to vector<16xf32>
    %5 = vector.shape_cast %4 : vector<16xf32> to vector<1x16xf32>
    %c0_3 = arith.constant 0 : index
    %c0_4 = arith.constant 0 : index
    %6 = vector.load %arg3[%c0_3, %c0_4] : memref<5x1xf32, #tpu.memory_space<vmem>>, vector<5x1xf32>
    %7 = vector.broadcast %6 : vector<5x1xf32> to vector<5x16xf32>
    %8 = vector.broadcast %5 : vector<1x16xf32> to vector<5x16xf32>
    %9 = arith.subf %7, %8 : vector<5x16xf32>
    %10 = math.absf %9 : vector<5x16xf32>
    %cst_5 = arith.constant 0.000000e+00 : f32
    %11 = vector.broadcast %cst_5 : f32 to vector<5x16xf32>
    %12 = arith.subf %11, %10 : vector<5x16xf32>
    %cst_6 = arith.constant dense<0xFF800000> : vector<16xf32>
    %13 = vector.multi_reduction <maximumf>, %12, %cst_6 [0] : vector<5x16xf32> to vector<16xf32>
    %14 = vector.shape_cast %13 : vector<16xf32> to vector<1x16xf32>
    %15 = vector.broadcast %14 : vector<1x16xf32> to vector<5x16xf32>
    %16 = arith.subf %12, %15 : vector<5x16xf32>
    %17 = math.exp %16 : vector<5x16xf32>
    %cst_7 = arith.constant dense<0.000000e+00> : vector<16xf32>
    %18 = vector.multi_reduction <add>, %17, %cst_7 [0] : vector<5x16xf32> to vector<16xf32>
    %19 = vector.shape_cast %18 : vector<16xf32> to vector<1x16xf32>
    %20 = math.log %19 : vector<1x16xf32>
    %21 = arith.addf %20, %14 : vector<1x16xf32>
    %22 = vector.broadcast %21 : vector<1x16xf32> to vector<5x16xf32>
    %23 = arith.subf %12, %22 : vector<5x16xf32>
    %c0_8 = arith.constant 0 : index
    %c0_9 = arith.constant 0 : index
    %24 = vector.load %arg4[%c0_8, %c0_9] : memref<5x16xf32, #tpu.memory_space<vmem>>, vector<5x16xf32>
    tpu.vector_store %arg4[%c0_8, %c0_9], %23 {strides = array<i32>} : memref<5x16xf32, #tpu.memory_space<vmem>>, vector<5x16xf32>,
    return
  }
  func.func @transform_0(%arg0: i32) -> (i32, i32) {
    %c0_i32 = arith.constant 0 : i32
    %c0_i32_0 = arith.constant 0 : i32
    return %c0_i32, %arg0 : i32, i32
  }
  func.func @transform_1(%arg0: i32) -> (i32, i32) {
    %c0_i32 = arith.constant 0 : i32
    %c0_i32_0 = arith.constant 0 : i32
    %c0_i32_1 = arith.constant 0 : i32
    return %c0_i32, %c0_i32_0 : i32, i32
  }
  func.func @transform_2(%arg0: i32) -> (i32, i32) {
    %c0_i32 = arith.constant 0 : i32
    %c0_i32_0 = arith.constant 0 : i32
    %c0_i32_1 = arith.constant 0 : i32
    return %c0_i32, %c0_i32_0 : i32, i32
  }
  func.func @transform_3(%arg0: i32) -> (i32, i32) {
    %c0_i32 = arith.constant 0 : i32
    %c0_i32_0 = arith.constant 0 : i32
    return %c0_i32, %arg0 : i32, i32
  }
}

</mosaic_0001>

<bundles_post_ra>
// kernel: tpu_custom_call.1
= control target key start
LH: loop header
LB: loop body
LE: loop exit
PB: predicated region body
PF: predicated region fallthrough
CT: control target
= control target key end

     0   :  { %v139_v2 = vmov 0   ;;  %s203_s0 = inlined_call_operand.vmem [shape: f32[32,16], index: 0, kind: input, shape index: {}]   ;;  %s204_s1 = inlined_call_operand.vmem [shape: f32[32,1], index: 1, kind: input, shape index: {}]   ;;  %s205_s2 = inlined_call_operand.vmem [shape: f32[5,1], index: 2, kind: input, shape index: {}]   ;;  %s206_s3 = inlined_call_operand.hbm [shape: f32[5,16], index: 3, kind: output, shape index: {}]  }
   0x1   :  { %v21_v0 = vld [vmem:[%s204_s1 + $0x10] sm:$0xff]  ;;  %v19_v1 = vld [vmem:[%s204_s1] sm:$0xff]  ;;  %110 = vset.pattern.permute.xlu1 %v139_v2  ;;  %109 = vset.pattern.permute.xlu0 %v139_v2 }
   0x2   :  { %35 = vperm.xlu1 %110, %v21_v0   ;;  %25 = vperm.xlu0 %109, %v19_v1  }
   0x3   :  { %8 = vsyncpa [#allocation3], 0  ;;  %v22_v3 = vld [vmem:[%s204_s1 + $0x18] sm:$0xff]  ;;  %v20_v4 = vld [vmem:[%s204_s1 + $0x8] sm:$0xff]  ;;  %vm47_vm0 = vcmask 130048   ;;  %vm70_vm1 = vcmask 126976  }
   0x4   :  { %v61_v5 = vld [vmem:[%s205_s2] sm:$0x1f]  ;;  %v17_v9 = vld [vmem:[%s203_s0 + $0x10] sm:$0xff]  ;;  %v16_v10 = vld [vmem:[%s203_s0 + $0x8] sm:$0xff] }
   0x5   :  { %v15_v8 = vld [vmem:[%s203_s0] sm:$0xff]  ;;  %v18_v13 = vld [vmem:[%s203_s0 + $0x18] sm:$0xff]  ;;  %s140_s0 = smov [#allocation2]  }
   0x6   :  { %40 = vperm.xlu1 %110, %v22_v3   ;;  %30 = vperm.xlu0 %109, %v20_v4   ;;  %s99_s28 = sshll.u32 %s140_s0, 4  ;;  %s100_s28 = int_to_ptr.vmem [resolvable:$true] %s99_s28 }
   0x7   :  { %s115_s29 = scalar_lea.vmem %s100_s28, 128  ;;  %p120_p1 = scmp.lt.s32.totalorder %s100_s28, %s100_s28 }
   0x8   :  { %p116_p0 = scmp.ne.s32.totalorder %s100_s28, %s115_s29  ;;  %p121_p2 = scmp.lt.s32.totalorder %s115_s29, %s115_s29 }
   0xa   :  { %64 = vperm.xlu0 %109, %v61_v5   ;;  %p122_p3 = por %p121_p2, %p120_p1 }
   0xc   :  { %p123_p4 = pnand %p122_p3, %p116_p0 }
  0x81   :  { %v36_v6 = vpop.permute.xlu1 %35  ;;  %v26_v7 = vpop.permute.xlu0 %25 }
  0x82   :  { %v43_v11 = vmul.f32 %v26_v7, %v15_v8  ;;  %v45_v15 = vmul.f32 %v36_v6, %v17_v9 }
  0x84   :  { %v48_v17 = vsel %vm47_vm0, %v43_v11, 0.0  ;;  %v51_v21 = vsel %vm47_vm0, %v45_v15, 0.0 }
  0x85   :  { %v41_v12 = vpop.permute.xlu1 %40  ;;  %v31_v14 = vpop.permute.xlu0 %30 }
  0x86   :  { %v44_v16 = vmul.f32 %v31_v14, %v16_v10  ;;  %v46_v18 = vmul.f32 %v41_v12, %v18_v13 }
  0x88   :  { %v49_v19 = vsel %vm47_vm0, %v44_v16, 0.0  ;;  %v53_v23 = vsel %vm47_vm0, %v46_v18, 0.0 }
  0x89   :  { %v50_v20 = vadd.f32 %v49_v19, %v48_v17  ;;  %v65_v31 = vpop.permute.xlu0 %64 }
  0x8b   :  { %v52_v22 = vadd.f32 %v51_v21, %v50_v20 }
  0x8d   :  { %v54_v24 = vadd.f32 %v53_v23, %v52_v22 }
  0x8f   :  { %v55_v25 = vrot.slane %v54_v24, 4 }
  0x91   :  { %v56_v26 = vadd.f32 %v55_v25, %v54_v24 }
  0x93   :  { %v57_v27 = vrot.slane %v56_v26, 2 }
  0x95   :  { %v58_v28 = vadd.f32 %v57_v27, %v56_v26 }
  0x97   :  { %v59_v29 = vrot.slane %v58_v28, 1 }
  0x99   :  { %v60_v30 = vadd.f32 %v59_v29, %v58_v28 }
  0x9b   :  { %v67_v32 = vsub.f32 %v65_v31, %v60_v30 }
  0x9d   :  { %v68_v33 = vand.u32 2147483647, %v67_v32 }
  0x9f   :  { %v69_v34 = vsub.f32 0.0, %v68_v33 }
  0xa1   :  { %v71_v35 = vsel %vm70_vm1, %v69_v34, -inf }
  0xa2   :  { %v72_v36 = vrot.slane %v71_v35, 4 }
  0xa4   :  { %v73_v37 = vmax.f32 %v71_v35, %v72_v36 }
  0xa6   :  { %v74_v38 = vrot.slane %v73_v37, 2 }
  0xa8   :  { %v75_v39 = vmax.f32 %v73_v37, %v74_v38 }
  0xaa   :  { %v76_v40 = vrot.slane %v75_v39, 1 }
  0xac   :  { %v77_v41 = vmax.f32 %v75_v39, %v76_v40 }
  0xae   :  { %v78_v42 = vsub.f32 %v69_v34, %v77_v41 }
  0xb0   :  { %v79_v43 = vmul.f32 1.442695, %v78_v42 }
  0xb2   :  { %111 = vpow2.f32 %v79_v43 }
  0xbc   :  { %v112_v44 = vpop.eup %111 }
  0xbd   :  { %v81_v45 = vsel %vm70_vm1, %v112_v44, 0.0 }
  0xbe   :  { %v82_v46 = vrot.slane %v81_v45, 4 }
  0xc0   :  { %v83_v47 = vadd.f32 %v82_v46, %v81_v45 }
  0xc2   :  { %v84_v48 = vrot.slane %v83_v47, 2 }
  0xc4   :  { %v85_v49 = vadd.f32 %v84_v48, %v83_v47 }
  0xc6   :  { %v86_v50 = vrot.slane %v85_v49, 1 }
  0xc8   :  { %v87_v51 = vadd.f32 %v86_v50, %v85_v49 }
  0xca   :  { %113 = vlog2.f32 %v87_v51 }
  0xd4   :  { %v114_v52 = vpop.eup %113 }
  0xd5   :  { %v89_v53 = vmul.f32 0.6931472, %v114_v52 }
  0xd7   :  { %v90_v54 = vadd.f32 %v89_v53, %v77_v41 }
  0xd9   :  { %v91_v55 = vsub.f32 %v69_v34, %v90_v54 }
  0xdb   :  { %92 = vst.msk [vmem:[#allocation2] sm:$0x1f] %vm70_vm1, %v91_v55 }
  0xdc   :  { %126 = shalt.err (!%p123_p4)
}
  0xdd   :  { %s127_s5 = scalar_lea.hbm %s206_s3, 128 }
  0xde   :  { %p128_p5 = scmp.ne.s32.totalorder %s206_s3, %s127_s5  ;;  %p131_p6 = scmp.lt.u32.totalorder %s127_s5, %s206_s3 }
  0xe0   :  { %p133_p7 = pnand %p131_p6, %p128_p5 }
  0xe2   :  { %136 = shalt.err (!%p133_p7)
}
  0xe3   :  { %102 = dma.vmem_to_hbm [thread:$0]  %s100_s28, 128, %s206_s3, [#allocation3]  }
  0xe4   :  { %137 = dma.done.wait [#allocation3], 128  }
  0xe5   :  { %138 = vsyncadd [#allocation3], 4294967168 }
  0xe6   :  { %106 = vsyncpa [#allocation3], 1 }

</bundles_post_ra>
